<compile_context>
chip_gen: v5e
topology: v5e:2x2
jax: 0.10.0
libtpu: 0.0.40
codegen_flags: <defaults>
</compile_context>

<pallas_src>
import functools

import jax
import jax.numpy as jnp
from jax import lax
from jax.experimental import pallas as pl
from jax.experimental.pallas import tpu as pltpu

NUM_CLASSES = 88
BN_EPS = 1e-5
_VMEM_LIMIT = 48 * 1024 * 1024          # safe on v5e/v6e (128 MiB) and v7x (64 MiB)


def _round_up(x, m):
    return (x + m - 1) // m * m


def _pick_tile(dim, cap):
    """Largest multiple of 128 <= cap that divides `dim` (dim is a multiple of 128)."""
    best = 128
    t = 256
    while t <= min(cap, dim):
        if dim % t == 0:
            best = t
        t += 128
    return best


def _pick_tm(m, cap=512):
    """Largest multiple of 8 <= cap that divides m, or None if there is none."""
    best = None
    t = 8
    while t <= min(cap, m):
        if m % t == 0:
            best = t
        t += 8
    return best


# ----------------------------------------------------------------------------
# Pallas kernel 1: tiled bf16 matmul, f32 accumulation, fused shift(+res)(+ReLU)
# ----------------------------------------------------------------------------
def _matmul_fused_kernel(*refs, relu, has_res):
    if has_res:
        a_ref, b_ref, t_ref, r_ref, o_ref, acc_ref = refs
    else:
        a_ref, b_ref, t_ref, o_ref, acc_ref = refs
        r_ref = None
    k = pl.program_id(2)

    @pl.when(k == 0)
    def _():
        acc_ref[...] = jnp.zeros_like(acc_ref)

    acc_ref[...] += jnp.dot(a_ref[...], b_ref[...],
                            preferred_element_type=jnp.float32)

    @pl.when(k == pl.num_programs(2) - 1)
    def _():
        y = acc_ref[...] + t_ref[...]                       # BN shift (scale folded into W)
        if has_res:
            y = y + r_ref[...].astype(jnp.float32)          # fused residual add
        if relu:
            y = jnp.maximum(y, 0.0)
        o_ref[...] = y.astype(o_ref.dtype)


def matmul_fused(a, w_p, shift_p, relu=False, residual=None, out_dtype=jnp.bfloat16):
    """relu?((a @ w_p) + shift [+ residual]); padded channels stay exactly zero.

    a:        [M, K]  (K must equal w_p.shape[0]; cast to bf16)
    w_p:      [K, Np] bf16, BN scale pre-folded, zero-padded columns
    shift_p:  [Np]    f32 (zero in padded columns)
    residual: optional [M, Np]
    """
    m, k = a.shape
    kp, np_ = w_p.shape
    assert k == kp, (k, kp)

    a_p = a.astype(jnp.bfloat16)
    r_p = None if residual is None else residual.astype(jnp.bfloat16)

    tm = _pick_tm(m)
    mp = m
    if tm is None:                                   # m < 8 or not a multiple of 8
        mp = _round_up(max(m, 8), 8)
        a_p = jnp.pad(a_p, ((0, mp - m), (0, 0)))
        if r_p is not None:
            r_p = jnp.pad(r_p, ((0, mp - m), (0, 0)))
        tm = _pick_tm(mp)
    tk = _pick_tile(kp, cap=768)
    tn = _pick_tile(np_, cap=1024)                   # cap 1024 keeps >=2 N-tiles at N=2048

    t_p = shift_p.reshape(1, np_)
    inputs = [a_p, w_p, t_p]
    in_specs = [
        pl.BlockSpec((tm, tk), lambda i, j, kk: (i, kk)),
        pl.BlockSpec((tk, tn), lambda i, j, kk: (kk, j)),
        pl.BlockSpec((1, tn), lambda i, j, kk: (0, j)),
    ]
    has_res = r_p is not None
    if has_res:
        inputs.append(r_p)
        in_specs.append(pl.BlockSpec((tm, tn), lambda i, j, kk: (i, j)))

    out = pl.pallas_call(
        functools.partial(_matmul_fused_kernel, relu=relu, has_res=has_res),
        out_shape=jax.ShapeDtypeStruct((mp, np_), out_dtype),
        grid_spec=pltpu.PrefetchScalarGridSpec(
            num_scalar_prefetch=0,
            grid=(mp // tm, np_ // tn, kp // tk),
            in_specs=in_specs,
            out_specs=pl.BlockSpec((tm, tn), lambda i, j, kk: (i, j)),
            scratch_shapes=[pltpu.VMEM((tm, tn), jnp.float32)],
        ),
        compiler_params=pltpu.CompilerParams(
            dimension_semantics=("parallel", "parallel", "arbitrary"),
            vmem_limit_bytes=_VMEM_LIMIT),
    )(*inputs)
    return out if mp == m else out[:m]


# ----------------------------------------------------------------------------
# Pallas kernel 2: fused 3x3 stride-1 conv + BN shift + ReLU (no HBM im2col)
# ----------------------------------------------------------------------------
def _conv3x3_s1_kernel(x_ref, w_ref, t_ref, o_ref, acc_ref, *, ho, wo, wp, relu):
    """x_ref: (1, Hp*Wp, Cp) padded canvas;  w_ref: (9, Cp, Np);  out: (1, Ho, Wo, Np).

    out[r, c] lives at flat canvas index r*Wp + c; tap (di, dj) is a pure row
    shift by di*Wp + dj of the flattened padded input, so each tap is one
    aligned full-canvas matmul whose f32 product is accumulated row-shifted.
    Rows with c >= Wo are wrap-around garbage and are simply never written out.
    """
    mspan = (ho - 1) * wp + wo
    # tap 0 initializes the accumulator, taps 1..8 accumulate
    acc_ref[...] = jnp.dot(x_ref[0], w_ref[0],
                           preferred_element_type=jnp.float32)[:mspan, :]
    for t in range(1, 9):
        off = (t // 3) * wp + (t % 3)
        p = jnp.dot(x_ref[0], w_ref[t], preferred_element_type=jnp.float32)
        acc_ref[...] += p[off:off + mspan, :]
    shift = t_ref[...]                                 # (1, Np) f32
    for r in range(ho):                                # skip the W-pad garbage rows
        y = acc_ref[r * wp:r * wp + wo, :] + shift
        if relu:
            y = jnp.maximum(y, 0.0)
        o_ref[0, r, :, :] = y.astype(o_ref.dtype)


def _conv3x3_fused_fits(xshape, np_):
    n, h, w, c = xshape
    hp, wp = h + 2, w + 2
    mspan = (h - 1) * wp + w
    vmem = (2 * hp * wp * c * 2          # input canvas (double-buffered)
            + 2 * 9 * c * np_ * 2        # weights
            + 2 * h * w * np_ * 2        # output (double-buffered)
            + mspan * np_ * 4            # f32 accumulator
            + hp * wp * np_ * 4)         # per-tap f32 product temporary
    return vmem < 40 * 1024 * 1024


def conv3x3_s1_fused(x, cp, relu=True):
    n, h, w, c = x.shape
    hp, wp = h + 2, w + 2
    np_ = cp['np']
    mspan = (h - 1) * wp + w
    xp = jnp.pad(x, ((0, 0), (1, 1), (1, 1), (0, 0)))          # zero spatial ring
    xf = xp.reshape(n, hp * wp, c)                             # free collapse
    return pl.pallas_call(
        functools.partial(_conv3x3_s1_kernel, ho=h, wo=w, wp=wp, relu=relu),
        out_shape=jax.ShapeDtypeStruct((n, h, w, np_), jnp.bfloat16),
        grid_spec=pltpu.PrefetchScalarGridSpec(
            num_scalar_prefetch=0,
            grid=(n,),
            in_specs=[
                pl.BlockSpec((1, hp * wp, c), lambda i: (i, 0, 0)),
                pl.BlockSpec((9, c, np_), lambda i: (0, 0, 0)),
                pl.BlockSpec((1, np_), lambda i: (0, 0)),
            ],
            out_specs=pl.BlockSpec((1, h, w, np_), lambda i: (i, 0, 0, 0)),
            scratch_shapes=[pltpu.VMEM((mspan, np_), jnp.float32)],
        ),
        compiler_params=pltpu.CompilerParams(
            dimension_semantics=("parallel",),
            vmem_limit_bytes=_VMEM_LIMIT),
    )(xf, cp['w'], cp['shift'].reshape(1, np_))


# ----------------------------------------------------------------------------
# Plain-JAX glue: im2col (fallback), conv wrappers, maxpool
# ----------------------------------------------------------------------------
def im2col(x, kh, kw, stride, pad):
    """x: [N,H,W,C] -> patches [N*Ho*Wo, kh*kw*C] (feature order: (i, j, c))."""
    n, h, w, c = x.shape
    xp = jnp.pad(x, ((0, 0), (pad, pad), (pad, pad), (0, 0)))
    ho = (h + 2 * pad - kh) // stride + 1
    wo = (w + 2 * pad - kw) // stride + 1
    cols = []
    for i in range(kh):
        for j in range(kw):
            cols.append(xp[:, i:i + stride * ho:stride,
                           j:j + stride * wo:stride, :])
    patches = jnp.concatenate(cols, axis=-1)
    return patches.reshape(n * ho * wo, kh * kw * c), (n, ho, wo)


def conv1x1_bn(x, cp, stride=1, relu=False, residual=None):
    if stride > 1:
        # TODO(synk): fold the stride-2 subsample into the matmul A index_map
        # instead of materializing the strided slice (3 downsample convs).
        x = x[:, ::stride, ::stride, :]
    n, h, w, c = x.shape
    a = x.reshape(n * h * w, c)                        # channels already padded
    w2 = cp['w'].reshape(cp['cinp'], cp['np'])
    res2d = None if residual is None else residual.reshape(n * h * w, cp['np'])
    y = matmul_fused(a, w2, cp['shift'], relu=relu, residual=res2d)
    return y.reshape(n, h, w, cp['np'])


def conv3x3_im2col_bn(x, cp, stride, relu=True):
    patches, (n, ho, wo) = im2col(x, 3, 3, stride, 1)
    w2 = cp['w'].reshape(9 * cp['cinp'], cp['np'])
    y = matmul_fused(patches, w2, cp['shift'], relu=relu)
    return y.reshape(n, ho, wo, cp['np'])


def conv3x3_bn(x, cp, stride, relu=True):
    if stride == 1 and _conv3x3_fused_fits(x.shape, cp['np']):
        return conv3x3_s1_fused(x, cp, relu=relu)
    return conv3x3_im2col_bn(x, cp, stride, relu=relu)


def conv_stem_bn(x, cp):
    """7x7 stride-2 pad-3 conv on the 3-channel image (im2col, single conv)."""
    patches, (n, ho, wo) = im2col(x, 7, 7, 2, 3)        # [M, 147]
    kpad = cp['w'].shape[0] - patches.shape[1]
    patches = jnp.pad(patches, ((0, 0), (0, kpad)))
    y = matmul_fused(patches, cp['w'], cp['shift'], relu=True)
    return y.reshape(n, ho, wo, cp['np'])


def maxpool_3x3_s2(x):
    return lax.reduce_window(
        x, jnp.array(-jnp.inf, x.dtype), lax.max,
        window_dimensions=(1, 3, 3, 1),
        window_strides=(1, 2, 2, 1),
        padding=((0, 0), (1, 1), (1, 1), (0, 0)))


# ----------------------------------------------------------------------------
# Parameter init (deterministic) and prep (BN fold + pad, done once)
# ----------------------------------------------------------------------------
def _init_conv(key, cout, cin, kh, kw):
    fan_in = cin * kh * kw
    return jax.random.normal(key, (cout, cin, kh, kw), jnp.float32) * jnp.sqrt(2.0 / fan_in)


def _init_bn(c):
    return dict(gamma=jnp.ones((c,), jnp.float32),
                beta=jnp.zeros((c,), jnp.float32),
                mean=jnp.zeros((c,), jnp.float32),
                var=jnp.ones((c,), jnp.float32))


def init_params(key):
    keys = iter(jax.random.split(key, 256))
    params = {'conv1_w': _init_conv(next(keys), 64, 3, 7, 7), 'bn1': _init_bn(64)}

    layers = []
    in_c = 64
    # ResNet-101 stage configuration: (planes, num_blocks, stride)
    for planes, n_blocks, stride in [(64, 3, 1), (128, 4, 2), (256, 23, 2), (512, 3, 2)]:
        blocks = []
        for b in range(n_blocks):
            s = stride if b == 0 else 1
            out_c = planes * 4
            blk = dict(
                conv1_w=_init_conv(next(keys), planes, in_c, 1, 1), bn1=_init_bn(planes),
                conv2_w=_init_conv(next(keys), planes, planes, 3, 3), bn2=_init_bn(planes),
                conv3_w=_init_conv(next(keys), out_c, planes, 1, 1), bn3=_init_bn(out_c),
            )
            if s != 1 or in_c != out_c:
                blk['down_w'] = _init_conv(next(keys), out_c, in_c, 1, 1)
                blk['down_bn'] = _init_bn(out_c)
            blocks.append((blk, s))
            in_c = out_c
        layers.append(blocks)
    params['layers'] = layers

    bound = 1.0 / jnp.sqrt(jnp.float32(512 * 4))
    params['fc_w'] = jax.random.uniform(next(keys), (NUM_CLASSES, 512 * 4),
                                        jnp.float32, -bound, bound)
    params['fc_b'] = jax.random.uniform(next(keys), (NUM_CLASSES,),
                                        jnp.float32, -bound, bound)
    return params


def _bn_scale_shift(bn):
    scale = bn['gamma'] / jnp.sqrt(bn['var'] + BN_EPS)
    shift = bn['beta'] - bn['mean'] * scale
    return scale, shift


def _prep_conv(w, bn):
    """Fold BN scale into W; layout [taps, Cin_pad, Cout_pad] bf16, zero-padded."""
    cout, cin, kh, kw = w.shape
    scale, shift = _bn_scale_shift(bn)
    w2 = jnp.transpose(w, (2, 3, 1, 0)).reshape(kh * kw, cin, cout) * scale
    cinp, np_ = _round_up(cin, 128), _round_up(cout, 128)
    w_p = (jnp.zeros((kh * kw, cinp, np_), jnp.bfloat16)
           .at[:, :cin, :cout].set(w2.astype(jnp.bfloat16)))
    t_p = jnp.zeros((np_,), jnp.float32).at[:cout].set(shift)
    return dict(w=w_p, shift=t_p, np=np_, cinp=cinp, kh=kh, kw=kw)


def _prep_conv_stem(w, bn):
    """7x7 stem: flat [K_pad, Np] layout (image keeps its 3 input channels)."""
    cout, cin, kh, kw = w.shape
    scale, shift = _bn_scale_shift(bn)
    w2 = jnp.transpose(w, (2, 3, 1, 0)).reshape(kh * kw * cin, cout) * scale[None, :]
    K, N = w2.shape
    kp, np_ = _round_up(K, 128), _round_up(N, 128)
    w_p = jnp.zeros((kp, np_), jnp.bfloat16).at[:K, :N].set(w2.astype(jnp.bfloat16))
    t_p = jnp.zeros((np_,), jnp.float32).at[:N].set(shift)
    return dict(w=w_p, shift=t_p, np=np_)


def _prep_fc(fc_w, fc_b):
    w2 = fc_w.T                                        # [2048, 88], pre-transposed once
    K, N = w2.shape
    kp, np_ = _round_up(K, 128), _round_up(N, 128)
    w_p = jnp.zeros((kp, np_), jnp.bfloat16).at[:K, :N].set(w2.astype(jnp.bfloat16))
    t_p = jnp.zeros((np_,), jnp.float32).at[:N].set(fc_b)
    return dict(w=w_p, shift=t_p)


def prepare_params(raw):
    p = {'conv1': _prep_conv_stem(raw['conv1_w'], raw['bn1'])}
    layers = []
    for blocks in raw['layers']:
        new_blocks = []
        for blk, s in blocks:
            nb = dict(conv1=_prep_conv(blk['conv1_w'], blk['bn1']),
                      conv2=_prep_conv(blk['conv2_w'], blk['bn2']),
                      conv3=_prep_conv(blk['conv3_w'], blk['bn3']))
            if 'down_w' in blk:
                nb['down'] = _prep_conv(blk['down_w'], blk['down_bn'])
            new_blocks.append((nb, s))
        layers.append(new_blocks)
    p['layers'] = layers
    p['fc'] = _prep_fc(raw['fc_w'], raw['fc_b'])
    return p


# ----------------------------------------------------------------------------
# Forward pass (mirrors CatFaceIdentifier.forward)
# ----------------------------------------------------------------------------
def bottleneck(x, p, stride):
    if 'down' in p:
        identity = conv1x1_bn(x, p['down'], stride=stride, relu=False)
    else:
        identity = x
    out = conv1x1_bn(x, p['conv1'], relu=True)
    out = conv3x3_bn(out, p['conv2'], stride=stride, relu=True)
    # conv3 + BN + residual add + ReLU fused in the Pallas matmul epilogue
    out = conv1x1_bn(out, p['conv3'], relu=True, residual=identity)
    return out


def cat_face_identifier_forward(params, x_nchw):
    x = jnp.transpose(x_nchw, (0, 2, 3, 1)).astype(jnp.bfloat16)  # NCHW -> NHWC bf16
    x = conv_stem_bn(x, params['conv1'])
    x = maxpool_3x3_s2(x)
    for blocks in params['layers']:                                # layer1..layer4
        for blk, s in blocks:
            x = bottleneck(x, blk, s)
    x = jnp.mean(x.astype(jnp.float32), axis=(1, 2))               # avgpool + flatten
    logits = matmul_fused(x, params['fc']['w'], params['fc']['shift'],
                          relu=False, out_dtype=jnp.float32)
    return logits[:, :NUM_CLASSES]


if __name__ == "__main__":
    key = jax.random.PRNGKey(0)
    pkey, xkey = jax.random.split(key)
    raw_params = init_params(pkey)
    params = prepare_params(raw_params)
    # Small deterministic input consistent with the module (NCHW, 3 channels).
    x = jax.random.normal(xkey, (2, 3, 32, 32), jnp.float32)
    out = cat_face_identifier_forward(params, x)
    out = jax.block_until_ready(out)
    assert out.shape == (2, NUM_CLASSES), out.shape
    assert bool(jnp.all(jnp.isfinite(out)))
    print("KERNEL_OK")
</pallas_src>

<mosaic_0001>
module attributes {stable_mosaic.version = 11 : i64} {
  func.func @_matmul_fused_kernel(%arg0: i32, %arg1: i32, %arg2: i32, %arg3: memref<512x256xbf16, #tpu.memory_space<vmem>>, %arg4: memref<256x128xbf16, #tpu.memory_space<vmem>>, %arg5: memref<1x128xf32, #tpu.memory_space<vmem>>, %arg6: memref<512x128xbf16, #tpu.memory_space<vmem>>, %arg7: memref<512x128xf32, #tpu.memory_space<vmem>>) attributes {dimension_semantics = [#tpu.dimension_semantics<parallel>, #tpu.dimension_semantics<parallel>, #tpu.dimension_semantics<arbitrary>], iteration_bounds = array<i64: 1, 1, 1>, scalar_prefetch = 0 : i64, scratch_operands = 1 : i64, tpu.core_type = #tpu.core_type<tc>, window_params = [{transform_indices = @transform_0, window_bounds = array<i64: 512, 256>}, {transform_indices = @transform_1, window_bounds = array<i64: 256, 128>}, {transform_indices = @transform_2, window_bounds = array<i64: 1, 128>}, {transform_indices = @transform_3, window_bounds = array<i64: 512, 128>}]} {
    %c0_i32 = arith.constant 0 : i32
    %0 = arith.cmpi eq, %arg2, %c0_i32 : i32
    %1 = arith.extui %0 : i1 to i32
    %c0_i32_0 = arith.constant 0 : i32
    %2 = arith.cmpi ne, %1, %c0_i32_0 : i32
    scf.if %2 {
      %cst_10 = arith.constant 0.000000e+00 : f32
      %12 = vector.broadcast %cst_10 : f32 to vector<512x128xf32>
      %c0_11 = arith.constant 0 : index
      %c0_12 = arith.constant 0 : index
      %13 = vector.load %arg7[%c0_11, %c0_12] : memref<512x128xf32, #tpu.memory_space<vmem>>, vector<512x128xf32>
      tpu.vector_store %arg7[%c0_11, %c0_12], %12 {strides = array<i32>} : memref<512x128xf32, #tpu.memory_space<vmem>>, vector<512x128xf32>,
    } else {
    }
    %c0 = arith.constant 0 : index
    %c0_1 = arith.constant 0 : index
    %3 = vector.load %arg7[%c0, %c0_1] : memref<512x128xf32, #tpu.memory_space<vmem>>, vector<512x128xf32>
    %c0_2 = arith.constant 0 : index
    %c0_3 = arith.constant 0 : index
    %4 = vector.load %arg3[%c0_2, %c0_3] : memref<512x256xbf16, #tpu.memory_space<vmem>>, vector<512x256xbf16>
    %c0_4 = arith.constant 0 : index
    %c0_5 = arith.constant 0 : index
    %5 = vector.load %arg4[%c0_4, %c0_5] : memref<256x128xbf16, #tpu.memory_space<vmem>>, vector<256x128xbf16>
    %cst = arith.constant dense<0.000000e+00> : vector<512x128xf32>
    %6 = tpu.matmul %4, %5, %cst {dimension_numbers = #tpu.dot_dimension_numbers<[1], [0], [0], [1], [0, 0, 1, 1], [], []>} : vector<512x256xbf16>, vector<256x128xbf16>, vector<512x128xf32> -> vector<512x128xf32>
    %7 = arith.addf %3, %6 : vector<512x128xf32>
    %c0_6 = arith.constant 0 : index
    %c0_7 = arith.constant 0 : index
    %8 = vector.load %arg7[%c0_6, %c0_7] : memref<512x128xf32, #tpu.memory_space<vmem>>, vector<512x128xf32>
    tpu.vector_store %arg7[%c0_6, %c0_7], %7 {strides = array<i32>} : memref<512x128xf32, #tpu.memory_space<vmem>>, vector<512x128xf32>,
    %c0_i32_8 = arith.constant 0 : i32
    %9 = arith.cmpi eq, %arg2, %c0_i32_8 : i32
    %10 = arith.extui %9 : i1 to i32
    %c0_i32_9 = arith.constant 0 : i32
    %11 = arith.cmpi ne, %10, %c0_i32_9 : i32
    scf.if %11 {
      %c0_10 = arith.constant 0 : index
      %c0_11 = arith.constant 0 : index
      %12 = vector.load %arg7[%c0_10, %c0_11] : memref<512x128xf32, #tpu.memory_space<vmem>>, vector<512x128xf32>
      %c0_12 = arith.constant 0 : index
      %c0_13 = arith.constant 0 : index
      %13 = vector.load %arg5[%c0_12, %c0_13] : memref<1x128xf32, #tpu.memory_space<vmem>>, vector<1x128xf32>
      %14 = vector.broadcast %13 : vector<1x128xf32> to vector<512x128xf32>
      %15 = arith.addf %12, %14 : vector<512x128xf32>
      %cst_14 = arith.constant 0.000000e+00 : f32
      %16 = vector.broadcast %cst_14 : f32 to vector<512x128xf32>
      %17 = arith.maximumf %15, %16 : vector<512x128xf32>
      %18 = arith.truncf %17 : vector<512x128xf32> to vector<512x128xbf16>
      %c0_15 = arith.constant 0 : index
      %c0_16 = arith.constant 0 : index
      %19 = vector.load %arg6[%c0_15, %c0_16] : memref<512x128xbf16, #tpu.memory_space<vmem>>, vector<512x128xbf16>
      tpu.vector_store %arg6[%c0_15, %c0_16], %18 {strides = array<i32>} : memref<512x128xbf16, #tpu.memory_space<vmem>>, vector<512x128xbf16>,
    } else {
    }
    return
  }
  func.func @transform_0(%arg0: i32, %arg1: i32, %arg2: i32) -> (i32, i32) {
    %c0_i32 = arith.constant 0 : i32
    return %arg0, %arg2 : i32, i32
  }
  func.func @transform_1(%arg0: i32, %arg1: i32, %arg2: i32) -> (i32, i32) {
    %c0_i32 = arith.constant 0 : i32
    return %arg2, %arg1 : i32, i32
  }
  func.func @transform_2(%arg0: i32, %arg1: i32, %arg2: i32) -> (i32, i32) {
    %c0_i32 = arith.constant 0 : i32
    %c0_i32_0 = arith.constant 0 : i32
    return %c0_i32, %arg1 : i32, i32
  }
  func.func @transform_3(%arg0: i32, %arg1: i32, %arg2: i32) -> (i32, i32) {
    %c0_i32 = arith.constant 0 : i32
    return %arg0, %arg1 : i32, i32
  }
}

</mosaic_0001>

<bundles_post_ra>
// kernel: tpu_custom_call.1
= control target key start
LH: loop header
LB: loop body
LE: loop exit
PB: predicated region body
PF: predicated region fallthrough
CT: control target
= control target key end

     0   :  { %8 = vsyncpa [#allocation4], 0  ;;  %s2308_s0 = inlined_call_operand.hbm [shape: bf16[512,256], index: 0, kind: input, shape index: {}]   ;;  %s2309_s1 = inlined_call_operand.hbm [shape: bf16[256,128], index: 1, kind: input, shape index: {}]   ;;  %s2310_s2 = inlined_call_operand.vmem [shape: f32[1,128], index: 2, kind: input, shape index: {}]   ;;  %s2311_s3 = inlined_call_operand.hbm [shape: bf16[512,128], index: 3, kind: output, shape index: {}]  }
   0x1   :  { %9 = vsyncpa [#allocation7], 0 }
   0x2   :  { %10 = vsyncpa [#allocation5], 0  ;;  %s15_s14 = sshll.u32 %s2308_s0, 4  ;;  %s2197_s15 = smov [#allocation3]   ;;  %s16_s14 = int_to_ptr.hbm [resolvable:$true] %s15_s14 }
   0x3   :  { %s17_s16 = sshll.u32 %s2197_s15, 4  ;;  %s28_s19 = sshll.u32 %s2309_s1, 4  ;;  %s18_s16 = int_to_ptr.vmem [resolvable:$true] %s17_s16  ;;  %s29_s19 = int_to_ptr.hbm [resolvable:$true] %s28_s19 }
   0x4   :  { %s2198_s20 = smov 128   ;;  %s2199_s21 = smov 8  }
   0x5   :  { %23 = dma.hbm_to_vmem [thread:$0]  %s16_s14, 8192, %s18_s16, [#allocation4], %s2198_s20, %s2198_s20, %s2199_s21  }
   0x6   :  { %s2200_s22 = smov [#allocation6]   ;;  %s2201_s24 = smov 64  }
   0x7   :  { %s30_s23 = sshll.u32 %s2200_s22, 4  ;;  %s2202_s25 = smov 4   ;;  %s31_s23 = int_to_ptr.vmem [resolvable:$true] %s30_s23 }
   0x8   :  { %36 = dma.hbm_to_vmem [thread:$0]  %s29_s19, 2048, %s31_s23, [#allocation7], %s2201_s24, %s2201_s24, %s2202_s25  }
   0x9   :  { %2191 = dma.done.wait [#allocation4], 8192  }
   0xa   :  { %2192 = vsyncadd [#allocation4], 4294959104 }
   0xb   :  { %2193 = dma.done.wait [#allocation7], 2048  }
   0xc   :  { %2194 = vsyncadd [#allocation7], 4294965248  ;;  %v1895_v0 = vld [vmem:[#allocation6 + $0x38] sm:$0xff]  ;;  %v1894_v2 = vld [vmem:[#allocation6 + $0x30] sm:$0xff]  ;;  %s1490_s29 = sshll.u32 %s2311_s3, 4  ;;  %s1491_s29 = int_to_ptr.hbm [resolvable:$true] %s1490_s29 }
   0xd   :  { %v1903_v1 = vld [vmem:[#allocation6 + $0x78] sm:$0xff]  ;;  %691 = vmatpush.bf16.msra.mxu0 %v1895_v0  ;;  %2095 = vmatpush.bf16.msra.mxu2 %v1895_v0  ;;  %v1902_v3 = vld [vmem:[#allocation6 + $0x70] sm:$0xff]  ;;  %v1893_v4 = vld [vmem:[#allocation6 + $0x28] sm:$0xff] }
   0xe   :  { %860 = vmatpush.bf16.msra.mxu1 %v1903_v1  ;;  %2103 = vmatpush.bf16.msra.mxu3 %v1903_v1  ;;  %v1901_v5 = vld [vmem:[#allocation6 + $0x68] sm:$0xff]  ;;  %v1892_v6 = vld [vmem:[#allocation6 + $0x20] sm:$0xff]  ;;  %v1891_v8 = vld [vmem:[#allocation6 + $0x18] sm:$0xff] }
   0xf   :  { %v1900_v7 = vld [vmem:[#allocation6 + $0x60] sm:$0xff]  ;;  %v1899_v9 = vld [vmem:[#allocation6 + $0x58] sm:$0xff]  ;;  %v1890_v10 = vld [vmem:[#allocation6 + $0x10] sm:$0xff] }
  0x10   :  { %v1898_v11 = vld [vmem:[#allocation6 + $0x50] sm:$0xff]  ;;  %v1889_v12 = vld [vmem:[#allocation6 + $0x8] sm:$0xff]  ;;  %v1888_v14 = vld [vmem:[#allocation6] sm:$0xff] }
  0x11   :  { %692 = vmatpush.bf16.msra.mxu0 %v1894_v2  ;;  %2096 = vmatpush.bf16.msra.mxu2 %v1894_v2  ;;  %v1897_v13 = vld [vmem:[#allocation6 + $0x48] sm:$0xff]  ;;  %v1896_v15 = vld [vmem:[#allocation6 + $0x40] sm:$0xff]  ;;  %v1514_v28 = vld [vmem:[#allocation3 + $0x10] sm:$0xf] }
  0x12   :  { %861 = vmatpush.bf16.msra.mxu1 %v1902_v3  ;;  %2104 = vmatpush.bf16.msra.mxu3 %v1902_v3  ;;  %v1506_v16 = vld [vmem:[#allocation3] sm:$0xf]  ;;  %v1825_v17 = vld [vmem:[#allocation3 + $0x4] sm:$0xf0]  ;;  %v1824_v20 = vld [vmem:[#allocation3 + $0x4] sm:$0xf] }
  0x13   :  { %v1634_v18 = vld [vmem:[#allocation3 + $0x100] sm:$0xf]  ;;  %v1857_v19 = vld [vmem:[#allocation3 + $0x104] sm:$0xf0]  ;;  %v1508_v21 = vld [vmem:[#allocation3 + $0x8] sm:$0xf0]  ;;  %v1507_v24 = vor.u32 %v1825_v17, %v1506_v16 }
  0x14   :  { %v1856_v22 = vld [vmem:[#allocation3 + $0x104] sm:$0xf]  ;;  %v1636_v23 = vld [vmem:[#allocation3 + $0x108] sm:$0xf0]  ;;  %v1635_v25 = vor.u32 %v1857_v19, %v1634_v18  ;;  %v1511_v26 = vor.u32 %v1824_v20, %v1508_v21  ;;  %v1827_v29 = vld [vmem:[#allocation3 + $0x14] sm:$0xf0] }
  0x15   :  { %693 = vmatpush.bf16.msra.mxu0 %v1893_v4  ;;  %2097 = vmatpush.bf16.msra.mxu2 %v1893_v4  ;;  %v1639_v27 = vor.u32 %v1856_v22, %v1636_v23  ;;  %v1642_v30 = vld [vmem:[#allocation3 + $0x110] sm:$0xf]  ;;  %v1859_v31 = vld [vmem:[#allocation3 + $0x114] sm:$0xf0]  ;;  %v1826_v32 = vld [vmem:[#allocation3 + $0x14] sm:$0xf]  ;;  %v1515_v36 = vor.u32 %v1827_v29, %v1514_v28 }
  0x16   :  { %862 = vmatpush.bf16.msra.mxu1 %v1901_v5  ;;  %2105 = vmatpush.bf16.msra.mxu3 %v1901_v5  ;;  %v1516_v33 = vld [vmem:[#allocation3 + $0x18] sm:$0xf0]  ;;  %v1858_v34 = vld [vmem:[#allocation3 + $0x114] sm:$0xf]  ;;  %v1643_v37 = vor.u32 %v1859_v31, %v1642_v30  ;;  %v1522_v40 = vld [vmem:[#allocation3 + $0x20] sm:$0xf] }
  0x17   :  { %v1644_v35 = vld [vmem:[#allocation3 + $0x118] sm:$0xf0]  ;;  %v1519_v38 = vor.u32 %v1826_v32, %v1516_v33  ;;  %v1829_v41 = vld [vmem:[#allocation3 + $0x24] sm:$0xf0]  ;;  %v1650_v42 = vld [vmem:[#allocation3 + $0x120] sm:$0xf] }
  0x18   :  { %v1647_v39 = vor.u32 %v1858_v34, %v1644_v35  ;;  %v1861_v43 = vld [vmem:[#allocation3 + $0x124] sm:$0xf0]  ;;  %v1828_v44 = vld [vmem:[#allocation3 + $0x24] sm:$0xf]  ;;  %v1524_v45 = vld [vmem:[#allocation3 + $0x28] sm:$0xf0]  ;;  %v1523_v48 = vor.u32 %v1829_v41, %v1522_v40 }
  0x19   :  { %694 = vmatpush.bf16.msra.mxu0 %v1892_v6  ;;  %2098 = vmatpush.bf16.msra.mxu2 %v1892_v6  ;;  %v1860_v46 = vld [vmem:[#allocation3 + $0x124] sm:$0xf]  ;;  %v1652_v47 = vld [vmem:[#allocation3 + $0x128] sm:$0xf0]  ;;  %v1651_v49 = vor.u32 %v1861_v43, %v1650_v42  ;;  %v1527_v50 = vor.u32 %v1828_v44, %v1524_v45  ;;  %v1530_v52 = vld [vmem:[#allocation3 + $0x30] sm:$0xf] }
  0x1a   :  { %863 = vmatpush.bf16.msra.mxu1 %v1900_v7  ;;  %2106 = vmatpush.bf16.msra.mxu3 %v1900_v7  ;;  %v1655_v51 = vor.u32 %v1860_v46, %v1652_v47  ;;  %v1831_v53 = vld [vmem:[#allocation3 + $0x34] sm:$0xf0]  ;;  %v1658_v54 = vld [vmem:[#allocation3 + $0x130] sm:$0xf]  ;;  %v1830_v56 = vld [vmem:[#allocation3 + $0x34] sm:$0xf] }
  0x1b   :  { %v1863_v55 = vld [vmem:[#allocation3 + $0x134] sm:$0xf0]  ;;  %v1532_v57 = vld [vmem:[#allocation3 + $0x38] sm:$0xf0]  ;;  %v1862_v58 = vld [vmem:[#allocation3 + $0x134] sm:$0xf]  ;;  %v1531_v60 = vor.u32 %v1831_v53, %v1530_v52 }
  0x1c   :  { %v1660_v59 = vld [vmem:[#allocation3 + $0x138] sm:$0xf0]  ;;  %v1659_v61 = vor.u32 %v1863_v55, %v1658_v54  ;;  %v1535_v62 = vor.u32 %v1830_v56, %v1532_v57  ;;  %v1538_v0 = vld [vmem:[#allocation3 + $0x40] sm:$0xf]  ;;  %v1833_v1 = vld [vmem:[#allocation3 + $0x44] sm:$0xf0] }
  0x1d   :  { %695 = vmatpush.bf16.msra.mxu0 %v1891_v8  ;;  %2099 = vmatpush.bf16.msra.mxu2 %v1891_v8  ;;  %v1663_v63 = vor.u32 %v1862_v58, %v1660_v59  ;;  %v1666_v2 = vld [vmem:[#allocation3 + $0x140] sm:$0xf]  ;;  %v1865_v3 = vld [vmem:[#allocation3 + $0x144] sm:$0xf0]  ;;  %v1832_v4 = vld [vmem:[#allocation3 + $0x44] sm:$0xf]  ;;  %v1539_v8 = vor.u32 %v1833_v1, %v1538_v0 }
  0x1e   :  { %864 = vmatpush.bf16.msra.mxu1 %v1899_v9  ;;  %2107 = vmatpush.bf16.msra.mxu3 %v1899_v9  ;;  %v1540_v5 = vld [vmem:[#allocation3 + $0x48] sm:$0xf0]  ;;  %v1864_v6 = vld [vmem:[#allocation3 + $0x144] sm:$0xf]  ;;  %v1667_v9 = vor.u32 %v1865_v3, %v1666_v2  ;;  %v1834_v16 = vld [vmem:[#allocation3 + $0x54] sm:$0xf] }
  0x1f   :  { %v1668_v7 = vld [vmem:[#allocation3 + $0x148] sm:$0xf0]  ;;  %v1548_v17 = vld [vmem:[#allocation3 + $0x58] sm:$0xf0]  ;;  %v1866_v18 = vld [vmem:[#allocation3 + $0x154] sm:$0xf] }
  0x20   :  { %v1676_v19 = vld [vmem:[#allocation3 + $0x158] sm:$0xf0]  ;;  %v1551_v22 = vor.u32 %v1834_v16, %v1548_v17  ;;  %v1836_v28 = vld [vmem:[#allocation3 + $0x64] sm:$0xf]  ;;  %v1556_v29 = vld [vmem:[#allocation3 + $0x68] sm:$0xf0] }
  0x21   :  { %696 = vmatpush.bf16.msra.mxu0 %v1890_v10  ;;  %2100 = vmatpush.bf16.msra.mxu2 %v1890_v10  ;;  %v1543_v10 = vor.u32 %v1832_v4, %v1540_v5  ;;  %v1679_v23 = vor.u32 %v1866_v18, %v1676_v19  ;;  %v1868_v30 = vld [vmem:[#allocation3 + $0x164] sm:$0xf]  ;;  %v1684_v31 = vld [vmem:[#allocation3 + $0x168] sm:$0xf0]  ;;  %v1559_v34 = vor.u32 %v1836_v28, %v1556_v29  ;;  %v1838_v40 = vld [vmem:[#allocation3 + $0x74] sm:$0xf] }
  0x22   :  { %865 = vmatpush.bf16.msra.mxu1 %v1898_v11  ;;  %2108 = vmatpush.bf16.msra.mxu3 %v1898_v11  ;;  %v1671_v11 = vor.u32 %v1864_v6, %v1668_v7  ;;  %v1687_v35 = vor.u32 %v1868_v30, %v1684_v31  ;;  %v1564_v41 = vld [vmem:[#allocation3 + $0x78] sm:$0xf0]  ;;  %v1870_v42 = vld [vmem:[#allocation3 + $0x174] sm:$0xf]  ;;  %v1840_v52 = vld [vmem:[#allocation3 + $0x84] sm:$0xf] }
  0x23   :  { %v1692_v43 = vld [vmem:[#allocation3 + $0x178] sm:$0xf0]  ;;  %v1567_v46 = vor.u32 %v1838_v40, %v1564_v41  ;;  %v1572_v53 = vld [vmem:[#allocation3 + $0x88] sm:$0xf0]  ;;  %v1872_v54 = vld [vmem:[#allocation3 + $0x184] sm:$0xf] }
  0x24   :  { %v1695_v47 = vor.u32 %v1870_v42, %v1692_v43  ;;  %v1700_v55 = vld [vmem:[#allocation3 + $0x188] sm:$0xf0]  ;;  %v1575_v59 = vor.u32 %v1840_v52, %v1572_v53  ;;  %v1578_v6 = vld [vmem:[#allocation3 + $0x90] sm:$0xf]  ;;  %v1843_v7 = vld [vmem:[#allocation3 + $0x94] sm:$0xf0] }
  0x25   :  { %697 = vmatpush.bf16.msra.mxu0 %v1889_v12  ;;  %2101 = vmatpush.bf16.msra.mxu2 %v1889_v12  ;;  %v1546_v12 = vld [vmem:[#allocation3 + $0x50] sm:$0xf]  ;;  %v1586_v40 = vld [vmem:[#allocation3 + $0xa0] sm:$0xf]  ;;  %v1845_v41 = vld [vmem:[#allocation3 + $0xa4] sm:$0xf0] }
  0x26   :  { %866 = vmatpush.bf16.msra.mxu1 %v1897_v13  ;;  %2109 = vmatpush.bf16.msra.mxu3 %v1897_v13  ;;  %v1835_v13 = vld [vmem:[#allocation3 + $0x54] sm:$0xf0]  ;;  %v1714_v42 = vld [vmem:[#allocation3 + $0x1a0] sm:$0xf] }
  0x27   :  { %v1547_v20 = vor.u32 %v1835_v13, %v1546_v12  ;;  %v1842_v12 = vld [vmem:[#allocation3 + $0x94] sm:$0xf]  ;;  %v1580_v13 = vld [vmem:[#allocation3 + $0x98] sm:$0xf0] }
  0x29   :  { %698 = vmatpush.bf16.msra.mxu0 %v1888_v14  ;;  %2102 = vmatpush.bf16.msra.mxu2 %v1888_v14  ;;  %v1674_v14 = vld [vmem:[#allocation3 + $0x150] sm:$0xf] }
  0x2a   :  { %867 = vmatpush.bf16.msra.mxu1 %v1896_v15  ;;  %2110 = vmatpush.bf16.msra.mxu3 %v1896_v15  ;;  %v1867_v15 = vld [vmem:[#allocation3 + $0x154] sm:$0xf0] }
  0x2b   :  { %v1675_v21 = vor.u32 %v1867_v15, %v1674_v14  ;;  %v1874_v14 = vld [vmem:[#allocation3 + $0x194] sm:$0xf]  ;;  %v1708_v15 = vld [vmem:[#allocation3 + $0x198] sm:$0xf0] }
  0x2c   :  { %699 = vmatmul.bf16.vlgmr.msra.gmra.mxu0 %v1507_v24  ;;  %779 = vmatmul.bf16.vlgmr.msra.gmra.mxu2 %v1635_v25  ;;  %v1554_v24 = vld [vmem:[#allocation3 + $0x60] sm:$0xf]  ;;  %v1837_v25 = vld [vmem:[#allocation3 + $0x64] sm:$0xf0] }
  0x2d   :  { %868 = vmatmul.bf16.vlgmr.msra.gmra.mxu1 %v1511_v26  ;;  %948 = vmatmul.bf16.vlgmr.msra.gmra.mxu3 %v1639_v27  ;;  %v1682_v26 = vld [vmem:[#allocation3 + $0x160] sm:$0xf]  ;;  %v1869_v27 = vld [vmem:[#allocation3 + $0x164] sm:$0xf0]  ;;  %v1555_v32 = vor.u32 %v1837_v25, %v1554_v24 }
  0x2e   :  { %v1683_v33 = vor.u32 %v1869_v27, %v1682_v26  ;;  %v1711_v27 = vor.u32 %v1874_v14, %v1708_v15 }
  0x3c   :  { %704 = vmatmul.bf16.gmra.mxu0 %v1515_v36  ;;  %784 = vmatmul.bf16.gmra.mxu2 %v1643_v37  ;;  %v1562_v36 = vld [vmem:[#allocation3 + $0x70] sm:$0xf]  ;;  %v1839_v37 = vld [vmem:[#allocation3 + $0x74] sm:$0xf0] }
  0x3d   :  { %873 = vmatmul.bf16.gmra.mxu1 %v1519_v38  ;;  %953 = vmatmul.bf16.gmra.mxu3 %v1647_v39  ;;  %v1690_v38 = vld [vmem:[#allocation3 + $0x170] sm:$0xf]  ;;  %v1871_v39 = vld [vmem:[#allocation3 + $0x174] sm:$0xf0]  ;;  %v1563_v44 = vor.u32 %v1839_v37, %v1562_v36 }
  0x3e   :  { %v1691_v45 = vor.u32 %v1871_v39, %v1690_v38 }
  0x4c   :  { %709 = vmatmul.bf16.gmra.mxu0 %v1523_v48  ;;  %789 = vmatmul.bf16.gmra.mxu2 %v1651_v49  ;;  %v1570_v48 = vld [vmem:[#allocation3 + $0x80] sm:$0xf]  ;;  %v1841_v49 = vld [vmem:[#allocation3 + $0x84] sm:$0xf0] }
  0x4d   :  { %878 = vmatmul.bf16.gmra.mxu1 %v1527_v50  ;;  %958 = vmatmul.bf16.gmra.mxu3 %v1655_v51  ;;  %v1698_v50 = vld [vmem:[#allocation3 + $0x180] sm:$0xf]  ;;  %v1873_v51 = vld [vmem:[#allocation3 + $0x184] sm:$0xf0]  ;;  %v1571_v56 = vor.u32 %v1841_v49, %v1570_v48  ;;  %v1876_v48 = vld [vmem:[#allocation3 + $0x1a4] sm:$0xf] }
  0x4e   :  { %v1699_v57 = vor.u32 %v1873_v51, %v1698_v50  ;;  %v1716_v49 = vld [vmem:[#allocation3 + $0x1a8] sm:$0xf0] }
  0x5c   :  { %714 = vmatmul.bf16.gmra.mxu0 %v1531_v60  ;;  %794 = vmatmul.bf16.gmra.mxu2 %v1659_v61  ;;  %v1703_v60 = vor.u32 %v1872_v54, %v1700_v55  ;;  %v1587_v54 = vor.u32 %v1845_v41, %v1586_v40 }
  0x5d   :  { %883 = vmatmul.bf16.gmra.mxu1 %v1535_v62  ;;  %963 = vmatmul.bf16.gmra.mxu3 %v1663_v63  ;;  %v2236_v63 = vld [vmem:[%s2310_s2] ss:$0 sm:$0xff]  ;;  %s2203_s2 = smov [#allocation8]  }
  0x5e   :  { %s1488_s26 = sshll.u32 %s2203_s2, 4  ;;  %s1489_s26 = int_to_ptr.vmem [resolvable:$true] %s1488_s26 }
  0x6c   :  { %719 = vmatmul.bf16.gmra.mxu0 %v1539_v8  ;;  %799 = vmatmul.bf16.gmra.mxu2 %v1667_v9  ;;  %v1706_v8 = vld [vmem:[#allocation3 + $0x190] sm:$0xf] }
  0x6d   :  { %888 = vmatmul.bf16.gmra.mxu1 %v1543_v10  ;;  %968 = vmatmul.bf16.gmra.mxu3 %v1671_v11  ;;  %v1875_v11 = vld [vmem:[#allocation3 + $0x194] sm:$0xf0] }
  0x7c   :  { %724 = vmatmul.bf16.gmra.mxu0 %v1547_v20  ;;  %804 = vmatmul.bf16.gmra.mxu2 %v1675_v21  ;;  %v1579_v20 = vor.u32 %v1843_v7, %v1578_v6  ;;  %v1707_v21 = vor.u32 %v1875_v11, %v1706_v8  ;;  %v1594_v11 = vld [vmem:[#allocation3 + $0xb0] sm:$0xf] }
  0x7d   :  { %893 = vmatmul.bf16.gmra.mxu1 %v1551_v22  ;;  %973 = vmatmul.bf16.gmra.mxu3 %v1679_v23  ;;  %v1583_v22 = vor.u32 %v1842_v12, %v1580_v13  ;;  %v1847_v12 = vld [vmem:[#allocation3 + $0xb4] sm:$0xf0]  ;;  %v1722_v13 = vld [vmem:[#allocation3 + $0x1b0] sm:$0xf] }
  0x8c   :  { %729 = vmatmul.bf16.gmra.mxu0 %v1555_v32  ;;  %809 = vmatmul.bf16.gmra.mxu2 %v1683_v33 }
  0x8d   :  { %898 = vmatmul.bf16.gmra.mxu1 %v1559_v34  ;;  %978 = vmatmul.bf16.gmra.mxu3 %v1687_v35 }
  0x9c   :  { %734 = vmatmul.bf16.gmra.mxu0 %v1563_v44  ;;  %814 = vmatmul.bf16.gmra.mxu2 %v1691_v45  ;;  %v1877_v45 = vld [vmem:[#allocation3 + $0x1a4] sm:$0xf0] }
  0x9d   :  { %903 = vmatmul.bf16.gmra.mxu1 %v1567_v46  ;;  %983 = vmatmul.bf16.gmra.mxu3 %v1695_v47  ;;  %v1844_v46 = vld [vmem:[#allocation3 + $0xa4] sm:$0xf]  ;;  %v1588_v47 = vld [vmem:[#allocation3 + $0xa8] sm:$0xf0]  ;;  %v1715_v55 = vor.u32 %v1877_v45, %v1714_v42  ;;  %v1602_v45 = vld [vmem:[#allocation3 + $0xc0] sm:$0xf] }
  0xa9   :  { %v700_v58 = vpop.f32.mrf.mxu0 }
  0xaa   :  { %v869_v61 = vpop.f32.mrf.mxu1 }
  0xab   :  { %v870_v62 = vadd.f32 %v869_v61, %v700_v58  ;;  %v1719_v61 = vor.u32 %v1876_v48, %v1716_v49 }
  0xac   :  { %739 = vmatmul.bf16.gmra.mxu0 %v1571_v56  ;;  %819 = vmatmul.bf16.gmra.mxu2 %v1699_v57  ;;  %v1591_v56 = vor.u32 %v1844_v46, %v1588_v47  ;;  %v1849_v46 = vld [vmem:[#allocation3 + $0xc4] sm:$0xf0]  ;;  %v1730_v47 = vld [vmem:[#allocation3 + $0x1c0] sm:$0xf] }
  0xad   :  { %908 = vmatmul.bf16.gmra.mxu1 %v1575_v59  ;;  %988 = vmatmul.bf16.gmra.mxu3 %v1703_v60  ;;  %v1228_v4 = vadd.f32 %v2236_v63, %v870_v62 }
  0xaf   :  { %v780_v0 = vpop.f32.mrf.mxu2  ;;  %v1292_v16 = vmax.f32 %v1228_v4, 0.0 }
  0xb0   :  { %v949_v1 = vpop.f32.mrf.mxu3 }
  0xb1   :  { %v702_v2 = vpop.f32.mrf.mxu0  ;;  %v950_v9 = vadd.f32 %v949_v1, %v780_v0 }
  0xb2   :  { %v871_v3 = vpop.f32.mrf.mxu1 }
  0xb3   :  { %v872_v5 = vadd.f32 %v871_v3, %v702_v2  ;;  %v1260_v23 = vadd.f32 %v2236_v63, %v950_v9 }
  0xb5   :  { %v1229_v10 = vadd.f32 %v2236_v63, %v872_v5  ;;  %v1324_v30 = vmax.f32 %v1260_v23, 0.0 }
  0xb7   :  { %v1293_v17 = vmax.f32 %v1229_v10, 0.0  ;;  %v782_v18 = vpop.f32.mrf.mxu2 }
  0xb8   :  { %v951_v19 = vpop.f32.mrf.mxu3 }
  0xb9   :  { %v1907_v24 = vpack.c.bf16 %v1293_v17, %v1292_v16  ;;  %v952_v25 = vadd.f32 %v951_v19, %v782_v18  ;;  %v705_v26 = vpop.f32.mrf.mxu0  ;;  %v1879_v16 = vld [vmem:[#allocation3 + $0x1b4] sm:$0xf0]  ;;  %v1846_v17 = vld [vmem:[#allocation3 + $0xb4] sm:$0xf]  ;;  %v1596_v18 = vld [vmem:[#allocation3 + $0xb8] sm:$0xf0] }
  0xba   :  { %v874_v28 = vpop.f32.mrf.mxu1  ;;  %v1878_v19 = vld [vmem:[#allocation3 + $0x1b4] sm:$0xf] }
  0xbb   :  { %1908 = vst [vmem:[#allocation8] sm:$0xff] %v1907_v24   ;;  %v1261_v29 = vadd.f32 %v2236_v63, %v952_v25  ;;  %v875_v33 = vadd.f32 %v874_v28, %v705_v26  ;;  %v1595_v25 = vor.u32 %v1847_v12, %v1594_v11  ;;  %v1723_v26 = vor.u32 %v1879_v16, %v1722_v13  ;;  %v1610_v16 = vld [vmem:[#allocation3 + $0xd0] sm:$0xf] }
  0xbc   :  { %744 = vmatmul.bf16.gmra.mxu0 %v1579_v20  ;;  %824 = vmatmul.bf16.gmra.mxu2 %v1707_v21  ;;  %v1724_v20 = vld [vmem:[#allocation3 + $0x1b8] sm:$0xf0] }
  0xbd   :  { %v1325_v31 = vmax.f32 %v1261_v29, 0.0  ;;  %913 = vmatmul.bf16.gmra.mxu1 %v1583_v22  ;;  %993 = vmatmul.bf16.gmra.mxu3 %v1711_v27  ;;  %v1230_v38 = vadd.f32 %v2236_v63, %v875_v33  ;;  %v1599_v27 = vor.u32 %v1846_v17, %v1596_v18  ;;  %v1851_v17 = vld [vmem:[#allocation3 + $0xd4] sm:$0xf0]  ;;  %v1738_v18 = vld [vmem:[#allocation3 + $0x1d0] sm:$0xf] }
  0xbf   :  { %v1987_v32 = vpack.c.bf16 %v1325_v31, %v1324_v30  ;;  %v785_v34 = vpop.f32.mrf.mxu2  ;;  %v1294_v50 = vmax.f32 %v1230_v38, 0.0 }
  0xc0   :  { %v954_v35 = vpop.f32.mrf.mxu3 }
  0xc1   :  { %2079 = vst [vmem:[#allocation8 + $0x80] sm:$0xff] %v1987_v32   ;;  %v707_v36 = vpop.f32.mrf.mxu0  ;;  %v955_v43 = vadd.f32 %v954_v35, %v785_v34  ;;  %v1727_v32 = vor.u32 %v1878_v19, %v1724_v20 }
  0xc2   :  { %v876_v37 = vpop.f32.mrf.mxu1 }
  0xc3   :  { %v877_v39 = vadd.f32 %v876_v37, %v707_v36  ;;  %v1262_v57 = vadd.f32 %v2236_v63, %v955_v43 }
  0xc5   :  { %v1231_v44 = vadd.f32 %v2236_v63, %v877_v39  ;;  %v1326_v1 = vmax.f32 %v1262_v57, 0.0 }
  0xc7   :  { %v1295_v51 = vmax.f32 %v1231_v44, 0.0  ;;  %v787_v52 = vpop.f32.mrf.mxu2 }
  0xc8   :  { %v956_v53 = vpop.f32.mrf.mxu3 }
  0xc9   :  { %v1912_v58 = vpack.c.bf16 %v1295_v51, %v1294_v50  ;;  %v957_v59 = vadd.f32 %v956_v53, %v787_v52  ;;  %v710_v60 = vpop.f32.mrf.mxu0  ;;  %v1881_v50 = vld [vmem:[#allocation3 + $0x1c4] sm:$0xf0]  ;;  %v1848_v51 = vld [vmem:[#allocation3 + $0xc4] sm:$0xf]  ;;  %v1604_v52 = vld [vmem:[#allocation3 + $0xc8] sm:$0xf0] }
  0xca   :  { %v879_v62 = vpop.f32.mrf.mxu1  ;;  %v1880_v53 = vld [vmem:[#allocation3 + $0x1c4] sm:$0xf] }
  0xcb   :  { %2064 = vst [vmem:[#allocation8 + $0x8] sm:$0xff] %v1912_v58   ;;  %v1263_v0 = vadd.f32 %v2236_v63, %v957_v59  ;;  %v880_v4 = vadd.f32 %v879_v62, %v710_v60  ;;  %v1603_v59 = vor.u32 %v1849_v46, %v1602_v45  ;;  %v1731_v60 = vor.u32 %v1881_v50, %v1730_v47  ;;  %v1618_v50 = vld [vmem:[#allocation3 + $0xe0] sm:$0xf] }
  0xcc   :  { %749 = vmatmul.bf16.gmra.mxu0 %v1587_v54  ;;  %829 = vmatmul.bf16.gmra.mxu2 %v1715_v55  ;;  %v1732_v54 = vld [vmem:[#allocation3 + $0x1c8] sm:$0xf0] }
  0xcd   :  { %v1327_v2 = vmax.f32 %v1263_v0, 0.0  ;;  %918 = vmatmul.bf16.gmra.mxu1 %v1591_v56  ;;  %998 = vmatmul.bf16.gmra.mxu3 %v1719_v61  ;;  %v1232_v9 = vadd.f32 %v2236_v63, %v880_v4  ;;  %v1607_v61 = vor.u32 %v1848_v51, %v1604_v52  ;;  %v1853_v51 = vld [vmem:[#allocation3 + $0xe4] sm:$0xf0]  ;;  %v1746_v52 = vld [vmem:[#allocation3 + $0x1e0] sm:$0xf] }
  0xcf   :  { %v1992_v3 = vpack.c.bf16 %v1327_v2, %v1326_v1  ;;  %v790_v5 = vpop.f32.mrf.mxu2  ;;  %v1296_v21 = vmax.f32 %v1232_v9, 0.0 }
  0xd0   :  { %v959_v6 = vpop.f32.mrf.mxu3 }
  0xd1   :  { %2080 = vst [vmem:[#allocation8 + $0x88] sm:$0xff] %v1992_v3   ;;  %v712_v7 = vpop.f32.mrf.mxu0  ;;  %v960_v14 = vadd.f32 %v959_v6, %v790_v5  ;;  %v1735_v3 = vor.u32 %v1880_v53, %v1732_v54 }
  0xd2   :  { %v881_v8 = vpop.f32.mrf.mxu1 }
  0xd3   :  { %v882_v10 = vadd.f32 %v881_v8, %v712_v7  ;;  %v1264_v28 = vadd.f32 %v2236_v63, %v960_v14 }
  0xd5   :  { %v1233_v15 = vadd.f32 %v2236_v63, %v882_v10  ;;  %v1328_v35 = vmax.f32 %v1264_v28, 0.0 }
  0xd7   :  { %v1297_v22 = vmax.f32 %v1233_v15, 0.0  ;;  %v792_v23 = vpop.f32.mrf.mxu2 }
  0xd8   :  { %v961_v24 = vpop.f32.mrf.mxu3 }
  0xd9   :  { %v1917_v29 = vpack.c.bf16 %v1297_v22, %v1296_v21  ;;  %v962_v30 = vadd.f32 %v961_v24, %v792_v23  ;;  %v715_v31 = vpop.f32.mrf.mxu0  ;;  %v1883_v21 = vld [vmem:[#allocation3 + $0x1d4] sm:$0xf0]  ;;  %v1850_v22 = vld [vmem:[#allocation3 + $0xd4] sm:$0xf]  ;;  %v1612_v23 = vld [vmem:[#allocation3 + $0xd8] sm:$0xf0] }
  0xda   :  { %v884_v33 = vpop.f32.mrf.mxu1  ;;  %v1882_v24 = vld [vmem:[#allocation3 + $0x1d4] sm:$0xf] }
  0xdb   :  { %2065 = vst [vmem:[#allocation8 + $0x10] sm:$0xff] %v1917_v29   ;;  %v1265_v34 = vadd.f32 %v2236_v63, %v962_v30  ;;  %v885_v38 = vadd.f32 %v884_v33, %v715_v31  ;;  %v1611_v30 = vor.u32 %v1851_v17, %v1610_v16  ;;  %v1739_v31 = vor.u32 %v1883_v21, %v1738_v18  ;;  %v1626_v21 = vld [vmem:[#allocation3 + $0xf0] sm:$0xf] }
  0xdc   :  { %754 = vmatmul.bf16.gmra.mxu0 %v1595_v25  ;;  %834 = vmatmul.bf16.gmra.mxu2 %v1723_v26  ;;  %v1740_v25 = vld [vmem:[#allocation3 + $0x1d8] sm:$0xf0] }
  0xdd   :  { %v1329_v36 = vmax.f32 %v1265_v34, 0.0  ;;  %923 = vmatmul.bf16.gmra.mxu1 %v1599_v27  ;;  %1003 = vmatmul.bf16.gmra.mxu3 %v1727_v32  ;;  %v1234_v43 = vadd.f32 %v2236_v63, %v885_v38  ;;  %v1615_v32 = vor.u32 %v1850_v22, %v1612_v23  ;;  %v1855_v22 = vld [vmem:[#allocation3 + $0xf4] sm:$0xf0]  ;;  %v1754_v23 = vld [vmem:[#allocation3 + $0x1f0] sm:$0xf] }
  0xdf   :  { %v1997_v37 = vpack.c.bf16 %v1329_v36, %v1328_v35  ;;  %v795_v39 = vpop.f32.mrf.mxu2  ;;  %v1298_v55 = vmax.f32 %v1234_v43, 0.0 }
  0xe0   :  { %v964_v40 = vpop.f32.mrf.mxu3 }
  0xe1   :  { %2081 = vst [vmem:[#allocation8 + $0x90] sm:$0xff] %v1997_v37   ;;  %v717_v41 = vpop.f32.mrf.mxu0  ;;  %v965_v48 = vadd.f32 %v964_v40, %v795_v39  ;;  %v1743_v37 = vor.u32 %v1882_v24, %v1740_v25 }
  0xe2   :  { %v886_v42 = vpop.f32.mrf.mxu1 }
  0xe3   :  { %v887_v44 = vadd.f32 %v886_v42, %v717_v41  ;;  %v1266_v62 = vadd.f32 %v2236_v63, %v965_v48 }
  0xe5   :  { %v1235_v49 = vadd.f32 %v2236_v63, %v887_v44  ;;  %v1330_v6 = vmax.f32 %v1266_v62, 0.0 }
  0xe7   :  { %v1299_v56 = vmax.f32 %v1235_v49, 0.0  ;;  %v797_v57 = vpop.f32.mrf.mxu2 }
  0xe8   :  { %v966_v58 = vpop.f32.mrf.mxu3 }
  0xe9   :  { %v1922_v0 = vpack.c.bf16 %v1299_v56, %v1298_v55  ;;  %v967_v1 = vadd.f32 %v966_v58, %v797_v57  ;;  %v720_v2 = vpop.f32.mrf.mxu0  ;;  %v1885_v55 = vld [vmem:[#allocation3 + $0x1e4] sm:$0xf0]  ;;  %v1852_v56 = vld [vmem:[#allocation3 + $0xe4] sm:$0xf]  ;;  %v1620_v57 = vld [vmem:[#allocation3 + $0xe8] sm:$0xf0] }
  0xea   :  { %v889_v4 = vpop.f32.mrf.mxu1  ;;  %v1884_v58 = vld [vmem:[#allocation3 + $0x1e4] sm:$0xf] }
  0xeb   :  { %2066 = vst [vmem:[#allocation8 + $0x18] sm:$0xff] %v1922_v0   ;;  %v1267_v5 = vadd.f32 %v2236_v63, %v967_v1  ;;  %v890_v9 = vadd.f32 %v889_v4, %v720_v2  ;;  %v1619_v1 = vor.u32 %v1853_v51, %v1618_v50  ;;  %v1747_v2 = vor.u32 %v1885_v55, %v1746_v52 }
  0xec   :  { %759 = vmatmul.bf16.gmra.mxu0 %v1603_v59  ;;  %839 = vmatmul.bf16.gmra.mxu2 %v1731_v60  ;;  %v1748_v59 = vld [vmem:[#allocation3 + $0x1e8] sm:$0xf0] }
  0xed   :  { %v1331_v7 = vmax.f32 %v1267_v5, 0.0  ;;  %928 = vmatmul.bf16.gmra.mxu1 %v1607_v61  ;;  %1008 = vmatmul.bf16.gmra.mxu3 %v1735_v3  ;;  %v1236_v14 = vadd.f32 %v2236_v63, %v890_v9  ;;  %v1623_v3 = vor.u32 %v1852_v56, %v1620_v57 }
  0xef   :  { %v2002_v8 = vpack.c.bf16 %v1331_v7, %v1330_v6  ;;  %v800_v10 = vpop.f32.mrf.mxu2  ;;  %v1300_v26 = vmax.f32 %v1236_v14, 0.0 }
  0xf0   :  { %v969_v11 = vpop.f32.mrf.mxu3 }
  0xf1   :  { %2082 = vst [vmem:[#allocation8 + $0x98] sm:$0xff] %v2002_v8   ;;  %v722_v12 = vpop.f32.mrf.mxu0  ;;  %v970_v19 = vadd.f32 %v969_v11, %v800_v10  ;;  %v1751_v8 = vor.u32 %v1884_v58, %v1748_v59 }
  0xf2   :  { %v891_v13 = vpop.f32.mrf.mxu1 }
  0xf3   :  { %v892_v15 = vadd.f32 %v891_v13, %v722_v12  ;;  %v1268_v33 = vadd.f32 %v2236_v63, %v970_v19 }
  0xf5   :  { %v1237_v20 = vadd.f32 %v2236_v63, %v892_v15  ;;  %v1332_v40 = vmax.f32 %v1268_v33, 0.0 }
  0xf7   :  { %v1301_v27 = vmax.f32 %v1237_v20, 0.0  ;;  %v802_v28 = vpop.f32.mrf.mxu2 }
  0xf8   :  { %v971_v29 = vpop.f32.mrf.mxu3 }
  0xf9   :  { %v1927_v34 = vpack.c.bf16 %v1301_v27, %v1300_v26  ;;  %v972_v35 = vadd.f32 %v971_v29, %v802_v28  ;;  %v725_v36 = vpop.f32.mrf.mxu0  ;;  %v1887_v26 = vld [vmem:[#allocation3 + $0x1f4] sm:$0xf0]  ;;  %v1854_v27 = vld [vmem:[#allocation3 + $0xf4] sm:$0xf]  ;;  %v1628_v28 = vld [vmem:[#allocation3 + $0xf8] sm:$0xf0] }
  0xfa   :  { %v894_v38 = vpop.f32.mrf.mxu1  ;;  %v1886_v29 = vld [vmem:[#allocation3 + $0x1f4] sm:$0xf] }
  0xfb   :  { %2067 = vst [vmem:[#allocation8 + $0x20] sm:$0xff] %v1927_v34   ;;  %v1269_v39 = vadd.f32 %v2236_v63, %v972_v35  ;;  %v895_v43 = vadd.f32 %v894_v38, %v725_v36  ;;  %v1627_v35 = vor.u32 %v1855_v22, %v1626_v21  ;;  %v1755_v36 = vor.u32 %v1887_v26, %v1754_v23 }
  0xfc   :  { %764 = vmatmul.bf16.gmra.mxu0 %v1611_v30  ;;  %844 = vmatmul.bf16.gmra.mxu2 %v1739_v31  ;;  %v1756_v30 = vld [vmem:[#allocation3 + $0x1f8] sm:$0xf0] }
  0xfd   :  { %v1333_v41 = vmax.f32 %v1269_v39, 0.0  ;;  %933 = vmatmul.bf16.gmra.mxu1 %v1615_v32  ;;  %1013 = vmatmul.bf16.gmra.mxu3 %v1743_v37  ;;  %v1238_v48 = vadd.f32 %v2236_v63, %v895_v43  ;;  %v1631_v37 = vor.u32 %v1854_v27, %v1628_v28 }
  0xff   :  { %v2007_v42 = vpack.c.bf16 %v1333_v41, %v1332_v40  ;;  %v805_v44 = vpop.f32.mrf.mxu2  ;;  %v1302_v60 = vmax.f32 %v1238_v48, 0.0 }
 0x100   :  { %v974_v45 = vpop.f32.mrf.mxu3 }
 0x101   :  { %2083 = vst [vmem:[#allocation8 + $0xa0] sm:$0xff] %v2007_v42   ;;  %v727_v46 = vpop.f32.mrf.mxu0  ;;  %v975_v53 = vadd.f32 %v974_v45, %v805_v44  ;;  %v1759_v42 = vor.u32 %v1886_v29, %v1756_v30 }
 0x102   :  { %v896_v47 = vpop.f32.mrf.mxu1 }
 0x103   :  { %v897_v49 = vadd.f32 %v896_v47, %v727_v46  ;;  %v1270_v4 = vadd.f32 %v2236_v63, %v975_v53 }
 0x105   :  { %v1239_v54 = vadd.f32 %v2236_v63, %v897_v49  ;;  %v1334_v11 = vmax.f32 %v1270_v4, 0.0 }
 0x107   :  { %v1303_v61 = vmax.f32 %v1239_v54, 0.0  ;;  %v807_v62 = vpop.f32.mrf.mxu2 }
 0x108   :  { %v976_v0 = vpop.f32.mrf.mxu3 }
 0x109   :  { %v1932_v5 = vpack.c.bf16 %v1303_v61, %v1302_v60  ;;  %v977_v6 = vadd.f32 %v976_v0, %v807_v62  ;;  %v730_v7 = vpop.f32.mrf.mxu0 }
 0x10a   :  { %v899_v9 = vpop.f32.mrf.mxu1 }
 0x10b   :  { %2068 = vst [vmem:[#allocation8 + $0x28] sm:$0xff] %v1932_v5   ;;  %v1271_v10 = vadd.f32 %v2236_v63, %v977_v6  ;;  %v900_v14 = vadd.f32 %v899_v9, %v730_v7 }
 0x10c   :  { %769 = vmatmul.bf16.gmra.mxu0 %v1619_v1  ;;  %849 = vmatmul.bf16.gmra.mxu2 %v1747_v2 }
 0x10d   :  { %v1335_v12 = vmax.f32 %v1271_v10, 0.0  ;;  %938 = vmatmul.bf16.gmra.mxu1 %v1623_v3  ;;  %1018 = vmatmul.bf16.gmra.mxu3 %v1751_v8  ;;  %v1240_v19 = vadd.f32 %v2236_v63, %v900_v14 }
 0x10f   :  { %v2012_v13 = vpack.c.bf16 %v1335_v12, %v1334_v11  ;;  %v810_v15 = vpop.f32.mrf.mxu2  ;;  %v1304_v31 = vmax.f32 %v1240_v19, 0.0 }
 0x110   :  { %v979_v16 = vpop.f32.mrf.mxu3 }
 0x111   :  { %2084 = vst [vmem:[#allocation8 + $0xa8] sm:$0xff] %v2012_v13   ;;  %v732_v17 = vpop.f32.mrf.mxu0  ;;  %v980_v24 = vadd.f32 %v979_v16, %v810_v15 }
 0x112   :  { %v901_v18 = vpop.f32.mrf.mxu1 }
 0x113   :  { %v902_v20 = vadd.f32 %v901_v18, %v732_v17  ;;  %v1272_v38 = vadd.f32 %v2236_v63, %v980_v24 }
 0x115   :  { %v1241_v25 = vadd.f32 %v2236_v63, %v902_v20  ;;  %v1336_v45 = vmax.f32 %v1272_v38, 0.0 }
 0x117   :  { %v1305_v32 = vmax.f32 %v1241_v25, 0.0  ;;  %v812_v33 = vpop.f32.mrf.mxu2 }
 0x118   :  { %v981_v34 = vpop.f32.mrf.mxu3 }
 0x119   :  { %v1937_v39 = vpack.c.bf16 %v1305_v32, %v1304_v31  ;;  %v982_v40 = vadd.f32 %v981_v34, %v812_v33  ;;  %v735_v41 = vpop.f32.mrf.mxu0 }
 0x11a   :  { %v904_v43 = vpop.f32.mrf.mxu1 }
 0x11b   :  { %2069 = vst [vmem:[#allocation8 + $0x30] sm:$0xff] %v1937_v39   ;;  %v1273_v44 = vadd.f32 %v2236_v63, %v982_v40  ;;  %v905_v48 = vadd.f32 %v904_v43, %v735_v41 }
 0x11c   :  { %774 = vmatmul.bf16.gmra.mxu0 %v1627_v35  ;;  %854 = vmatmul.bf16.gmra.mxu2 %v1755_v36 }
 0x11d   :  { %v1337_v46 = vmax.f32 %v1273_v44, 0.0  ;;  %943 = vmatmul.bf16.gmra.mxu1 %v1631_v37  ;;  %1023 = vmatmul.bf16.gmra.mxu3 %v1759_v42  ;;  %v1242_v53 = vadd.f32 %v2236_v63, %v905_v48 }
 0x11f   :  { %v2017_v47 = vpack.c.bf16 %v1337_v46, %v1336_v45  ;;  %v815_v49 = vpop.f32.mrf.mxu2  ;;  %v1306_v57 = vmax.f32 %v1242_v53, 0.0 }
 0x120   :  { %v984_v50 = vpop.f32.mrf.mxu3 }
 0x121   :  { %2085 = vst [vmem:[#allocation8 + $0xb0] sm:$0xff] %v2017_v47   ;;  %v737_v51 = vpop.f32.mrf.mxu0  ;;  %v985_v55 = vadd.f32 %v984_v50, %v815_v49 }
 0x122   :  { %v906_v52 = vpop.f32.mrf.mxu1 }
 0x123   :  { %v907_v54 = vadd.f32 %v906_v52, %v737_v51  ;;  %v1274_v61 = vadd.f32 %v2236_v63, %v985_v55 }
 0x125   :  { %v1243_v56 = vadd.f32 %v2236_v63, %v907_v54  ;;  %v1338_v4 = vmax.f32 %v1274_v61, 0.0 }
 0x127   :  { %v1307_v58 = vmax.f32 %v1243_v56, 0.0  ;;  %v817_v59 = vpop.f32.mrf.mxu2 }
 0x128   :  { %v986_v60 = vpop.f32.mrf.mxu3 }
 0x129   :  { %v1942_v62 = vpack.c.bf16 %v1307_v58, %v1306_v57  ;;  %v987_v0 = vadd.f32 %v986_v60, %v817_v59  ;;  %v740_v1 = vpop.f32.mrf.mxu0 }
 0x12a   :  { %v909_v2 = vpop.f32.mrf.mxu1 }
 0x12b   :  { %2070 = vst [vmem:[#allocation8 + $0x38] sm:$0xff] %v1942_v62   ;;  %v1275_v3 = vadd.f32 %v2236_v63, %v987_v0  ;;  %v910_v7 = vadd.f32 %v909_v2, %v740_v1 }
 0x12d   :  { %v1339_v5 = vmax.f32 %v1275_v3, 0.0  ;;  %v1244_v12 = vadd.f32 %v2236_v63, %v910_v7 }
 0x12f   :  { %v2022_v6 = vpack.c.bf16 %v1339_v5, %v1338_v4  ;;  %v820_v8 = vpop.f32.mrf.mxu2  ;;  %v1308_v16 = vmax.f32 %v1244_v12, 0.0 }
 0x130   :  { %v989_v9 = vpop.f32.mrf.mxu3 }
 0x131   :  { %2086 = vst [vmem:[#allocation8 + $0xb8] sm:$0xff] %v2022_v6   ;;  %v742_v10 = vpop.f32.mrf.mxu0  ;;  %v990_v14 = vadd.f32 %v989_v9, %v820_v8 }
 0x132   :  { %v911_v11 = vpop.f32.mrf.mxu1 }
 0x133   :  { %v912_v13 = vadd.f32 %v911_v11, %v742_v10  ;;  %v1276_v20 = vadd.f32 %v2236_v63, %v990_v14 }
 0x135   :  { %v1245_v15 = vadd.f32 %v2236_v63, %v912_v13  ;;  %v1340_v26 = vmax.f32 %v1276_v20, 0.0 }
 0x137   :  { %v1309_v17 = vmax.f32 %v1245_v15, 0.0  ;;  %v822_v18 = vpop.f32.mrf.mxu2 }
 0x138   :  { %v991_v19 = vpop.f32.mrf.mxu3 }
 0x139   :  { %v1947_v21 = vpack.c.bf16 %v1309_v17, %v1308_v16  ;;  %v992_v22 = vadd.f32 %v991_v19, %v822_v18  ;;  %v745_v23 = vpop.f32.mrf.mxu0 }
 0x13a   :  { %v914_v24 = vpop.f32.mrf.mxu1 }
 0x13b   :  { %2071 = vst [vmem:[#allocation8 + $0x40] sm:$0xff] %v1947_v21   ;;  %v1277_v25 = vadd.f32 %v2236_v63, %v992_v22  ;;  %v915_v29 = vadd.f32 %v914_v24, %v745_v23 }
 0x13d   :  { %v1341_v27 = vmax.f32 %v1277_v25, 0.0  ;;  %v1246_v34 = vadd.f32 %v2236_v63, %v915_v29 }
 0x13f   :  { %v2027_v28 = vpack.c.bf16 %v1341_v27, %v1340_v26  ;;  %v825_v30 = vpop.f32.mrf.mxu2  ;;  %v1310_v38 = vmax.f32 %v1246_v34, 0.0 }
 0x140   :  { %v994_v31 = vpop.f32.mrf.mxu3 }
 0x141   :  { %2087 = vst [vmem:[#allocation8 + $0xc0] sm:$0xff] %v2027_v28   ;;  %v747_v32 = vpop.f32.mrf.mxu0  ;;  %v995_v36 = vadd.f32 %v994_v31, %v825_v30 }
 0x142   :  { %v916_v33 = vpop.f32.mrf.mxu1 }
 0x143   :  { %v917_v35 = vadd.f32 %v916_v33, %v747_v32  ;;  %v1278_v42 = vadd.f32 %v2236_v63, %v995_v36 }
 0x145   :  { %v1247_v37 = vadd.f32 %v2236_v63, %v917_v35  ;;  %v1342_v48 = vmax.f32 %v1278_v42, 0.0 }
 0x147   :  { %v1311_v39 = vmax.f32 %v1247_v37, 0.0  ;;  %v827_v40 = vpop.f32.mrf.mxu2 }
 0x148   :  { %v996_v41 = vpop.f32.mrf.mxu3 }
 0x149   :  { %v1952_v43 = vpack.c.bf16 %v1311_v39, %v1310_v38  ;;  %v997_v44 = vadd.f32 %v996_v41, %v827_v40  ;;  %v750_v45 = vpop.f32.mrf.mxu0 }
 0x14a   :  { %v919_v46 = vpop.f32.mrf.mxu1 }
 0x14b   :  { %2072 = vst [vmem:[#allocation8 + $0x48] sm:$0xff] %v1952_v43   ;;  %v1279_v47 = vadd.f32 %v2236_v63, %v997_v44  ;;  %v920_v51 = vadd.f32 %v919_v46, %v750_v45 }
 0x14d   :  { %v1343_v49 = vmax.f32 %v1279_v47, 0.0  ;;  %v1248_v56 = vadd.f32 %v2236_v63, %v920_v51 }
 0x14f   :  { %v2032_v50 = vpack.c.bf16 %v1343_v49, %v1342_v48  ;;  %v830_v52 = vpop.f32.mrf.mxu2  ;;  %v1312_v60 = vmax.f32 %v1248_v56, 0.0 }
 0x150   :  { %v999_v53 = vpop.f32.mrf.mxu3 }
 0x151   :  { %2088 = vst [vmem:[#allocation8 + $0xc8] sm:$0xff] %v2032_v50   ;;  %v752_v54 = vpop.f32.mrf.mxu0  ;;  %v1000_v58 = vadd.f32 %v999_v53, %v830_v52 }
 0x152   :  { %v921_v55 = vpop.f32.mrf.mxu1 }
 0x153   :  { %v922_v57 = vadd.f32 %v921_v55, %v752_v54  ;;  %v1280_v1 = vadd.f32 %v2236_v63, %v1000_v58 }
 0x155   :  { %v1249_v59 = vadd.f32 %v2236_v63, %v922_v57  ;;  %v1344_v7 = vmax.f32 %v1280_v1, 0.0 }
 0x157   :  { %v1313_v61 = vmax.f32 %v1249_v59, 0.0  ;;  %v832_v62 = vpop.f32.mrf.mxu2 }
 0x158   :  { %v1001_v0 = vpop.f32.mrf.mxu3 }
 0x159   :  { %v1957_v2 = vpack.c.bf16 %v1313_v61, %v1312_v60  ;;  %v1002_v3 = vadd.f32 %v1001_v0, %v832_v62  ;;  %v755_v4 = vpop.f32.mrf.mxu0 }
 0x15a   :  { %v924_v5 = vpop.f32.mrf.mxu1 }
 0x15b   :  { %2073 = vst [vmem:[#allocation8 + $0x50] sm:$0xff] %v1957_v2   ;;  %v1281_v6 = vadd.f32 %v2236_v63, %v1002_v3  ;;  %v925_v10 = vadd.f32 %v924_v5, %v755_v4 }
 0x15d   :  { %v1345_v8 = vmax.f32 %v1281_v6, 0.0  ;;  %v1250_v15 = vadd.f32 %v2236_v63, %v925_v10 }
 0x15f   :  { %v2037_v9 = vpack.c.bf16 %v1345_v8, %v1344_v7  ;;  %v835_v11 = vpop.f32.mrf.mxu2  ;;  %v1314_v19 = vmax.f32 %v1250_v15, 0.0 }
 0x160   :  { %v1004_v12 = vpop.f32.mrf.mxu3 }
 0x161   :  { %2089 = vst [vmem:[#allocation8 + $0xd0] sm:$0xff] %v2037_v9   ;;  %v757_v13 = vpop.f32.mrf.mxu0  ;;  %v1005_v17 = vadd.f32 %v1004_v12, %v835_v11 }
 0x162   :  { %v926_v14 = vpop.f32.mrf.mxu1 }
 0x163   :  { %v927_v16 = vadd.f32 %v926_v14, %v757_v13  ;;  %v1282_v23 = vadd.f32 %v2236_v63, %v1005_v17 }
 0x165   :  { %v1251_v18 = vadd.f32 %v2236_v63, %v927_v16  ;;  %v1346_v29 = vmax.f32 %v1282_v23, 0.0 }
 0x167   :  { %v1315_v20 = vmax.f32 %v1251_v18, 0.0  ;;  %v837_v21 = vpop.f32.mrf.mxu2 }
 0x168   :  { %v1006_v22 = vpop.f32.mrf.mxu3 }
 0x169   :  { %v1962_v24 = vpack.c.bf16 %v1315_v20, %v1314_v19  ;;  %v1007_v25 = vadd.f32 %v1006_v22, %v837_v21  ;;  %v760_v26 = vpop.f32.mrf.mxu0 }
 0x16a   :  { %v929_v27 = vpop.f32.mrf.mxu1 }
 0x16b   :  { %2074 = vst [vmem:[#allocation8 + $0x58] sm:$0xff] %v1962_v24   ;;  %v1283_v28 = vadd.f32 %v2236_v63, %v1007_v25  ;;  %v930_v32 = vadd.f32 %v929_v27, %v760_v26 }
 0x16d   :  { %v1347_v30 = vmax.f32 %v1283_v28, 0.0  ;;  %v1252_v37 = vadd.f32 %v2236_v63, %v930_v32 }
 0x16f   :  { %v2042_v31 = vpack.c.bf16 %v1347_v30, %v1346_v29  ;;  %v840_v33 = vpop.f32.mrf.mxu2  ;;  %v1316_v41 = vmax.f32 %v1252_v37, 0.0 }
 0x170   :  { %v1009_v34 = vpop.f32.mrf.mxu3 }
 0x171   :  { %2090 = vst [vmem:[#allocation8 + $0xd8] sm:$0xff] %v2042_v31   ;;  %v762_v35 = vpop.f32.mrf.mxu0  ;;  %v1010_v39 = vadd.f32 %v1009_v34, %v840_v33 }
 0x172   :  { %v931_v36 = vpop.f32.mrf.mxu1 }
 0x173   :  { %v932_v38 = vadd.f32 %v931_v36, %v762_v35  ;;  %v1284_v45 = vadd.f32 %v2236_v63, %v1010_v39 }
 0x175   :  { %v1253_v40 = vadd.f32 %v2236_v63, %v932_v38  ;;  %v1348_v51 = vmax.f32 %v1284_v45, 0.0 }
 0x177   :  { %v1317_v42 = vmax.f32 %v1253_v40, 0.0  ;;  %v842_v43 = vpop.f32.mrf.mxu2 }
 0x178   :  { %v1011_v44 = vpop.f32.mrf.mxu3 }
 0x179   :  { %v1967_v46 = vpack.c.bf16 %v1317_v42, %v1316_v41  ;;  %v1012_v47 = vadd.f32 %v1011_v44, %v842_v43  ;;  %v765_v48 = vpop.f32.mrf.mxu0 }
 0x17a   :  { %v934_v49 = vpop.f32.mrf.mxu1 }
 0x17b   :  { %2075 = vst [vmem:[#allocation8 + $0x60] sm:$0xff] %v1967_v46   ;;  %v1285_v50 = vadd.f32 %v2236_v63, %v1012_v47  ;;  %v935_v54 = vadd.f32 %v934_v49, %v765_v48 }
 0x17d   :  { %v1349_v52 = vmax.f32 %v1285_v50, 0.0  ;;  %v1254_v59 = vadd.f32 %v2236_v63, %v935_v54 }
 0x17f   :  { %v2047_v53 = vpack.c.bf16 %v1349_v52, %v1348_v51  ;;  %v845_v55 = vpop.f32.mrf.mxu2  ;;  %v1318_v0 = vmax.f32 %v1254_v59, 0.0 }
 0x180   :  { %v1014_v56 = vpop.f32.mrf.mxu3 }
 0x181   :  { %2091 = vst [vmem:[#allocation8 + $0xe0] sm:$0xff] %v2047_v53   ;;  %v767_v57 = vpop.f32.mrf.mxu0  ;;  %v1015_v61 = vadd.f32 %v1014_v56, %v845_v55 }
 0x182   :  { %v936_v58 = vpop.f32.mrf.mxu1 }
 0x183   :  { %v937_v60 = vadd.f32 %v936_v58, %v767_v57  ;;  %v1286_v4 = vadd.f32 %v2236_v63, %v1015_v61 }
 0x185   :  { %v1255_v62 = vadd.f32 %v2236_v63, %v937_v60  ;;  %v1350_v10 = vmax.f32 %v1286_v4, 0.0 }
 0x187   :  { %v1319_v1 = vmax.f32 %v1255_v62, 0.0  ;;  %v847_v2 = vpop.f32.mrf.mxu2 }
 0x188   :  { %v1016_v3 = vpop.f32.mrf.mxu3 }
 0x189   :  { %v1972_v5 = vpack.c.bf16 %v1319_v1, %v1318_v0  ;;  %v1017_v6 = vadd.f32 %v1016_v3, %v847_v2  ;;  %v770_v7 = vpop.f32.mrf.mxu0 }
 0x18a   :  { %v939_v8 = vpop.f32.mrf.mxu1 }
 0x18b   :  { %2076 = vst [vmem:[#allocation8 + $0x68] sm:$0xff] %v1972_v5   ;;  %v1287_v9 = vadd.f32 %v2236_v63, %v1017_v6  ;;  %v940_v13 = vadd.f32 %v939_v8, %v770_v7 }
 0x18d   :  { %v1351_v11 = vmax.f32 %v1287_v9, 0.0  ;;  %v1256_v18 = vadd.f32 %v2236_v63, %v940_v13 }
 0x18f   :  { %v2052_v12 = vpack.c.bf16 %v1351_v11, %v1350_v10  ;;  %v850_v14 = vpop.f32.mrf.mxu2  ;;  %v1320_v22 = vmax.f32 %v1256_v18, 0.0 }
 0x190   :  { %v1019_v15 = vpop.f32.mrf.mxu3 }
 0x191   :  { %2092 = vst [vmem:[#allocation8 + $0xe8] sm:$0xff] %v2052_v12   ;;  %v772_v16 = vpop.f32.mrf.mxu0  ;;  %v1020_v20 = vadd.f32 %v1019_v15, %v850_v14 }
 0x192   :  { %v941_v17 = vpop.f32.mrf.mxu1 }
 0x193   :  { %v942_v19 = vadd.f32 %v941_v17, %v772_v16  ;;  %v1288_v26 = vadd.f32 %v2236_v63, %v1020_v20 }
 0x195   :  { %v1257_v21 = vadd.f32 %v2236_v63, %v942_v19  ;;  %v1352_v32 = vmax.f32 %v1288_v26, 0.0 }
 0x197   :  { %v1321_v23 = vmax.f32 %v1257_v21, 0.0  ;;  %v852_v24 = vpop.f32.mrf.mxu2 }
 0x198   :  { %v1021_v25 = vpop.f32.mrf.mxu3 }
 0x199   :  { %v1977_v27 = vpack.c.bf16 %v1321_v23, %v1320_v22  ;;  %v1022_v28 = vadd.f32 %v1021_v25, %v852_v24  ;;  %v775_v29 = vpop.f32.mrf.mxu0 }
 0x19a   :  { %v944_v30 = vpop.f32.mrf.mxu1 }
 0x19b   :  { %2077 = vst [vmem:[#allocation8 + $0x70] sm:$0xff] %v1977_v27   ;;  %v1289_v31 = vadd.f32 %v2236_v63, %v1022_v28  ;;  %v945_v35 = vadd.f32 %v944_v30, %v775_v29 }
 0x19d   :  { %v1353_v33 = vmax.f32 %v1289_v31, 0.0  ;;  %v1258_v40 = vadd.f32 %v2236_v63, %v945_v35 }
 0x19f   :  { %v2057_v34 = vpack.c.bf16 %v1353_v33, %v1352_v32  ;;  %v855_v36 = vpop.f32.mrf.mxu2  ;;  %v1322_v44 = vmax.f32 %v1258_v40, 0.0 }
 0x1a0   :  { %v1024_v37 = vpop.f32.mrf.mxu3 }
 0x1a1   :  { %2093 = vst [vmem:[#allocation8 + $0xf0] sm:$0xff] %v2057_v34   ;;  %v777_v38 = vpop.f32.mrf.mxu0  ;;  %v1025_v42 = vadd.f32 %v1024_v37, %v855_v36 }
 0x1a2   :  { %v946_v39 = vpop.f32.mrf.mxu1 }
 0x1a3   :  { %v947_v41 = vadd.f32 %v946_v39, %v777_v38  ;;  %v1290_v48 = vadd.f32 %v2236_v63, %v1025_v42 }
 0x1a5   :  { %v1259_v43 = vadd.f32 %v2236_v63, %v947_v41  ;;  %v1354_v52 = vmax.f32 %v1290_v48, 0.0 }
 0x1a7   :  { %v1323_v45 = vmax.f32 %v1259_v43, 0.0  ;;  %v857_v46 = vpop.f32.mrf.mxu2 }
 0x1a8   :  { %v1026_v47 = vpop.f32.mrf.mxu3 }
 0x1a9   :  { %v1982_v49 = vpack.c.bf16 %v1323_v45, %v1322_v44  ;;  %v1027_v50 = vadd.f32 %v1026_v47, %v857_v46 }
 0x1ab   :  { %2078 = vst [vmem:[#allocation8 + $0x78] sm:$0xff] %v1982_v49   ;;  %v1291_v51 = vadd.f32 %v2236_v63, %v1027_v50 }
 0x1ad   :  { %v1355_v53 = vmax.f32 %v1291_v51, 0.0 }
 0x1af   :  { %v2062_v54 = vpack.c.bf16 %v1355_v53, %v1354_v52 }
 0x1b1   :  { %2094 = vst [vmem:[#allocation8 + $0xf8] sm:$0xff] %v2062_v54  }
 0x1b2   :  { %1496 = dma.vmem_to_hbm [thread:$0]  %s1489_s26, 4096, %s1491_s29, [#allocation5], %s2201_s24, %s2201_s24, %s2202_s25  }
 0x1b3   :  { %2195 = dma.done.wait [#allocation5], 4096  }
 0x1b4   :  { %2196 = vsyncadd [#allocation5], 4294963200 }
 0x1b5   :  { %1501 = vsyncpa [#allocation4], 1 }
 0x1b6   :  { %1502 = vsyncpa [#allocation7], 1 }
 0x1b7   :  { %1503 = vsyncpa [#allocation5], 1 }

</bundles_post_ra>
